<compile_context>
chip_gen: v7x
topology: tpu7x:2x2x1
jax: 0.10.0
libtpu: 0.0.40
codegen_flags: <defaults>
</compile_context>

<pallas_src>
import functools

import jax
import jax.numpy as jnp
from jax.experimental import pallas as pl
from jax.experimental.pallas import tpu as pltpu


def _round_up(x, m):
    return ((x + m - 1) // m) * m


def _tpu_vmem_and_cores():
    """(scoped vmem_limit_bytes, number of TensorCores sharing the grid)."""
    vmem_phys = 64 * 1024 * 1024            # conservative default (v7x per-TC)
    try:
        vmem_phys = int(pltpu.get_tpu_info().vmem_capacity_bytes)
    except Exception:
        pass
    cores = 2                               # conservative: assume multi-TC
    try:
        kind = jax.devices()[0].device_kind.lower()
        if any(t in kind for t in ("v5 lite", "v5e", "v5litepod", "v6 lite", "v6e")):
            cores = 1                       # single-TC generations
        if "v7" in kind:
            vmem_phys = min(vmem_phys, 64 * 1024 * 1024)
    except Exception:
        pass
    # 64 MiB scoped limit on 128-MiB parts (v5e/v6e), 48 MiB on 64-MiB parts (v7x).
    vmem_limit = min(64 * 1024 * 1024, vmem_phys * 3 // 4)
    return vmem_limit, cores


def _sigmoid_one_eup(y):
    # sigmoid(y) == 0.5 * tanh(y/2) + 0.5  -> one EUP transcendental per element.
    return 0.5 * jnp.tanh(0.5 * y) + 0.5


# --------------------------------------------------------------------------
# Main path: one row tile covers the full (lane-padded) H*W extent.
# --------------------------------------------------------------------------
def _simam_rows_kernel(x_ref, o_ref, *, hw, hw_pad, inv_n, e_lambda):
    # x_ref/o_ref: (TM, hw_pad) tile; one row == one (b, c) feature map.
    xin = x_ref[...]
    x = xin.astype(jnp.float32)

    if hw_pad != hw:
        # Ragged lane block: lanes >= hw hold undefined data. Mask x ONCE;
        # padded lanes of xm then equal exactly -mu, so their contribution to
        # the raw sum of squares is (hw_pad - hw) * mu^2, removed analytically.
        lane = jax.lax.broadcasted_iota(jnp.int32, x.shape, dimension=1)
        xz = jnp.where(lane < hw, x, 0.0)
        mu = jnp.sum(xz, axis=-1, keepdims=True) * (1.0 / hw)
        xm = xz - mu
        s = jnp.sum(xm * xm, axis=-1, keepdims=True) - float(hw_pad - hw) * (mu * mu)
        s = jnp.maximum(s, 0.0)
    else:
        mu = jnp.mean(x, axis=-1, keepdims=True)
        xm = x - mu
        s = jnp.sum(xm * xm, axis=-1, keepdims=True)

    # Per-row scale: TM exact reciprocals instead of TM*HW divides.
    inv = pl.reciprocal(4.0 * (s * inv_n + e_lambda))        # (TM, 1)
    y = xm * xm * inv + 0.5
    attn = _sigmoid_one_eup(y)
    # Final multiply in the input dtype (bf16 stays bf16 on v6e/v7x).
    o_ref[...] = (xin * attn.astype(xin.dtype)).astype(o_ref.dtype)
    # Padded rows/lanes produce garbage here but Pallas masks their stores.


# --------------------------------------------------------------------------
# Lane-tiled fallback for very large H*W (two kernels).
# --------------------------------------------------------------------------
def _simam_stats_kernel(x_ref, mu_ref, inv_ref, acc_ref, mu_s,
                        *, hw, lane_tile, inv_n, e_lambda):
    # grid = (row_tiles, 2 phases, lane_tiles); phase 0: mean, phase 1: sum((x-mu)^2).
    p = pl.program_id(1)
    l = pl.program_id(2)
    n_l = pl.num_programs(2)

    @pl.when(l == 0)
    def _():
        acc_ref[...] = jnp.zeros_like(acc_ref)

    x = x_ref[...].astype(jnp.float32)
    lane = jax.lax.broadcasted_iota(jnp.int32, x.shape, dimension=1) + l * lane_tile
    mask = lane < hw

    @pl.when(p == 0)
    def _():
        acc_ref[...] += jnp.sum(jnp.where(mask, x, 0.0), axis=-1, keepdims=True)

    @pl.when(p == 1)
    def _():
        xm = jnp.where(mask, x - mu_s[...], 0.0)
        acc_ref[...] += jnp.sum(xm * xm, axis=-1, keepdims=True)

    @pl.when((p == 0) & (l == n_l - 1))
    def _():
        mu = acc_ref[...] * (1.0 / hw)
        mu_s[...] = mu
        mu_ref[...] = mu

    @pl.when((p == 1) & (l == n_l - 1))
    def _():
        s = jnp.maximum(acc_ref[...], 0.0)
        inv_ref[...] = pl.reciprocal(4.0 * (s * inv_n + e_lambda))


def _simam_apply_kernel(x_ref, mu_ref, inv_ref, o_ref):
    xin = x_ref[...]
    x = xin.astype(jnp.float32)
    xm = x - mu_ref[...]
    y = xm * xm * inv_ref[...] + 0.5
    attn = _sigmoid_one_eup(y)
    o_ref[...] = (xin * attn.astype(xin.dtype)).astype(o_ref.dtype)


# --------------------------------------------------------------------------
# Wrapper
# --------------------------------------------------------------------------
def simam(x, e_lambda=1e-4, *, lane_split=None, lane_tile=None):
    """SimAM forward. x: (B, C, H, W), any float dtype. Returns same shape/dtype."""
    b, c, h, w = x.shape
    bc = b * c
    hw = h * w
    inv_n = 1.0 / float(max(hw - 1, 1))       # guard hw == 1 (torch would NaN)

    itemsize = jnp.dtype(x.dtype).itemsize
    pack = 8 * max(1, 4 // itemsize)          # sublane pack: 8 f32, 16 bf16
    hw_pad = _round_up(hw, 128)

    vmem_limit, cores = _tpu_vmem_and_cores()
    vmem_budget = int(vmem_limit * 0.7)
    # Per-row VMEM cost of a full-width tile: double-buffered in + out in the
    # input dtype, plus ~3 tile-sized f32 intermediates during compute.
    bytes_per_row_full = hw_pad * (4 * itemsize + 3 * 4)

    if lane_split is None:
        lane_split = (hw_pad > 64 * 1024) or (pack * bytes_per_row_full > vmem_budget)

    target_elems = 2 * 1024 * 1024            # ~2M input elems per tile (HBM side)

    def _pick_row_tile(lane_width, bytes_per_row):
        rows_vmem = max(pack, (vmem_budget // bytes_per_row) // pack * pack)
        rows_target = max(pack, (target_elems // lane_width) // pack * pack)
        rt = min(rows_vmem, rows_target, _round_up(bc, pack))
        if cores > 1 and bc > pack:
            # Keep >= num_cores grid steps so both v7x TensorCores get work;
            # no artificial shrinking on single-TC v5e/v6e.
            rt = min(rt, max(pack, _round_up(pl.cdiv(bc, cores), pack)))
        return max(pack, rt)

    x2d = x.reshape(bc, hw)
    cparams = functools.partial(pltpu.CompilerParams, vmem_limit_bytes=vmem_limit)

    if not lane_split:
        row_tile = _pick_row_tile(hw_pad, bytes_per_row_full)
        grid = (pl.cdiv(bc, row_tile),)       # ragged last block: rows independent

        kernel = functools.partial(
            _simam_rows_kernel, hw=hw, hw_pad=hw_pad, inv_n=inv_n,
            e_lambda=float(e_lambda))

        out2d = pl.pallas_call(
            kernel,
            out_shape=jax.ShapeDtypeStruct((bc, hw), x.dtype),
            grid_spec=pltpu.PrefetchScalarGridSpec(
                num_scalar_prefetch=0,
                grid=grid,
                in_specs=[pl.BlockSpec((row_tile, hw_pad), lambda i: (i, 0))],
                out_specs=pl.BlockSpec((row_tile, hw_pad), lambda i: (i, 0)),
            ),
            compiler_params=cparams(dimension_semantics=("parallel",)),
        )(x2d)
    else:
        # Lane-tiled two-kernel path (large feature maps).
        if lane_tile is None:
            lane_tile = 16 * 1024
        lane_tile = min(max(128, _round_up(lane_tile, 128)), hw_pad)
        n_lt = pl.cdiv(hw, lane_tile)
        bytes_per_row = lane_tile * (4 * itemsize + 3 * 4)
        row_tile = _pick_row_tile(lane_tile, bytes_per_row)
        n_rt = pl.cdiv(bc, row_tile)

        stats_kernel = functools.partial(
            _simam_stats_kernel, hw=hw, lane_tile=lane_tile, inv_n=inv_n,
            e_lambda=float(e_lambda))

        mu, inv = pl.pallas_call(
            stats_kernel,
            out_shape=(jax.ShapeDtypeStruct((bc, 1), jnp.float32),
                       jax.ShapeDtypeStruct((bc, 1), jnp.float32)),
            grid_spec=pltpu.PrefetchScalarGridSpec(
                num_scalar_prefetch=0,
                grid=(n_rt, 2, n_lt),
                in_specs=[pl.BlockSpec((row_tile, lane_tile),
                                       lambda i, p, l: (i, l))],
                out_specs=[pl.BlockSpec((row_tile, 1), lambda i, p, l: (i, 0)),
                           pl.BlockSpec((row_tile, 1), lambda i, p, l: (i, 0))],
                scratch_shapes=[pltpu.VMEM((row_tile, 1), jnp.float32),
                                pltpu.VMEM((row_tile, 1), jnp.float32)],
            ),
            compiler_params=cparams(
                dimension_semantics=("parallel", "arbitrary", "arbitrary")),
        )(x2d)

        out2d = pl.pallas_call(
            _simam_apply_kernel,
            out_shape=jax.ShapeDtypeStruct((bc, hw), x.dtype),
            grid_spec=pltpu.PrefetchScalarGridSpec(
                num_scalar_prefetch=0,
                grid=(n_rt, n_lt),
                in_specs=[pl.BlockSpec((row_tile, lane_tile), lambda i, l: (i, l)),
                          pl.BlockSpec((row_tile, 1), lambda i, l: (i, 0)),
                          pl.BlockSpec((row_tile, 1), lambda i, l: (i, 0))],
                out_specs=pl.BlockSpec((row_tile, lane_tile), lambda i, l: (i, l)),
            ),
            compiler_params=cparams(dimension_semantics=("parallel", "arbitrary")),
        )(x2d, mu, inv)

    return out2d.reshape(b, c, h, w)


def simam_ref(x, e_lambda=1e-4):
    # Pure-JAX reference matching the PyTorch forward exactly.
    b, c, h, w = x.shape
    n = w * h - 1
    mu = jnp.mean(x, axis=(2, 3), keepdims=True)
    d = (x - mu) ** 2
    y = d / (4.0 * (jnp.sum(d, axis=(2, 3), keepdims=True) / n + e_lambda)) + 0.5
    return x * jax.nn.sigmoid(y)


if __name__ == "__main__":
    key = jax.random.PRNGKey(0)
    k1, k2, k3 = jax.random.split(key, 3)

    # 1) Main path, H*W a multiple of 128 (lane-dense, no masking).
    x1 = jax.random.normal(k1, (2, 4, 16, 16), dtype=jnp.float32)
    o1 = jax.block_until_ready(simam(x1))
    assert o1.shape == x1.shape and o1.dtype == x1.dtype
    assert jnp.allclose(o1, simam_ref(x1), atol=1e-5, rtol=1e-5), "mismatch (path 1)"

    # 2) Main path with ragged lane block + in-kernel masking (H*W = 49).
    x2 = jax.random.normal(k2, (2, 4, 7, 7), dtype=jnp.float32)
    o2 = jax.block_until_ready(simam(x2))
    assert jnp.allclose(o2, simam_ref(x2), atol=1e-5, rtol=1e-5), "mismatch (path 2)"

    # 3) Lane-tiled large-H*W fallback, forced at a small shape (H*W = 300, 3 chunks).
    x3 = jax.random.normal(k3, (1, 2, 10, 30), dtype=jnp.float32)
    o3 = jax.block_until_ready(simam(x3, lane_split=True, lane_tile=128))
    assert jnp.allclose(o3, simam_ref(x3), atol=1e-5, rtol=1e-5), "mismatch (path 3)"

    print("KERNEL_OK")
</pallas_src>

<mosaic_0001>
module attributes {stable_mosaic.version = 11 : i64} {
  func.func @_simam_rows_kernel(%arg0: i32, %arg1: memref<8x256xf32, #tpu.memory_space<vmem>>, %arg2: memref<8x256xf32, #tpu.memory_space<vmem>>) attributes {dimension_semantics = [#tpu.dimension_semantics<parallel>], iteration_bounds = array<i64: 1>, scalar_prefetch = 0 : i64, scratch_operands = 0 : i64, tpu.core_type = #tpu.core_type<tc>, window_params = [{transform_indices = @transform_0, window_bounds = array<i64: 8, 256>}, {transform_indices = @transform_1, window_bounds = array<i64: 8, 256>}]} {
    %c0 = arith.constant 0 : index
    %c0_0 = arith.constant 0 : index
    %0 = vector.load %arg1[%c0, %c0_0] : memref<8x256xf32, #tpu.memory_space<vmem>>, vector<8x256xf32>
    %cst = arith.constant dense<0.000000e+00> : vector<8xf32>
    %1 = vector.multi_reduction <add>, %0, %cst [1] : vector<8x256xf32> to vector<8xf32>
    %2 = vector.shape_cast %1 : vector<8xf32> to vector<8x1xf32>
    %cst_1 = arith.constant 2.560000e+02 : f32
    %3 = vector.broadcast %cst_1 : f32 to vector<8x1xf32>
    %4 = arith.divf %2, %3 : vector<8x1xf32>
    %5 = vector.broadcast %4 : vector<8x1xf32> to vector<8x256xf32>
    %6 = arith.subf %0, %5 : vector<8x256xf32>
    %7 = arith.mulf %6, %6 : vector<8x256xf32>
    %cst_2 = arith.constant dense<0.000000e+00> : vector<8xf32>
    %8 = vector.multi_reduction <add>, %7, %cst_2 [1] : vector<8x256xf32> to vector<8xf32>
    %9 = vector.shape_cast %8 : vector<8xf32> to vector<8x1xf32>
    %cst_3 = arith.constant 0.00392156886 : f32
    %10 = vector.broadcast %cst_3 : f32 to vector<8x1xf32>
    %11 = arith.mulf %9, %10 : vector<8x1xf32>
    %cst_4 = arith.constant 9.99999974E-5 : f32
    %12 = vector.broadcast %cst_4 : f32 to vector<8x1xf32>
    %13 = arith.addf %11, %12 : vector<8x1xf32>
    %cst_5 = arith.constant 4.000000e+00 : f32
    %14 = vector.broadcast %cst_5 : f32 to vector<8x1xf32>
    %15 = arith.mulf %14, %13 : vector<8x1xf32>
    %16 = tpu.reciprocal %15 : vector<8x1xf32> -> vector<8x1xf32>
    %17 = arith.mulf %6, %6 : vector<8x256xf32>
    %18 = vector.broadcast %16 : vector<8x1xf32> to vector<8x256xf32>
    %19 = arith.mulf %17, %18 : vector<8x256xf32>
    %cst_6 = arith.constant 5.000000e-01 : f32
    %20 = vector.broadcast %cst_6 : f32 to vector<8x256xf32>
    %21 = arith.addf %19, %20 : vector<8x256xf32>
    %cst_7 = arith.constant 5.000000e-01 : f32
    %22 = vector.broadcast %cst_7 : f32 to vector<8x256xf32>
    %23 = arith.mulf %22, %21 : vector<8x256xf32>
    %24 = math.tanh %23 : vector<8x256xf32>
    %cst_8 = arith.constant 5.000000e-01 : f32
    %25 = vector.broadcast %cst_8 : f32 to vector<8x256xf32>
    %26 = arith.mulf %25, %24 : vector<8x256xf32>
    %cst_9 = arith.constant 5.000000e-01 : f32
    %27 = vector.broadcast %cst_9 : f32 to vector<8x256xf32>
    %28 = arith.addf %26, %27 : vector<8x256xf32>
    %29 = arith.mulf %0, %28 : vector<8x256xf32>
    %c0_10 = arith.constant 0 : index
    %c0_11 = arith.constant 0 : index
    %30 = vector.load %arg2[%c0_10, %c0_11] : memref<8x256xf32, #tpu.memory_space<vmem>>, vector<8x256xf32>
    tpu.vector_store %arg2[%c0_10, %c0_11], %29 {strides = array<i32>} : memref<8x256xf32, #tpu.memory_space<vmem>>, vector<8x256xf32>,
    return
  }
  func.func @transform_0(%arg0: i32) -> (i32, i32) {
    %c0_i32 = arith.constant 0 : i32
    %c0_i32_0 = arith.constant 0 : i32
    return %arg0, %c0_i32 : i32, i32
  }
  func.func @transform_1(%arg0: i32) -> (i32, i32) {
    %c0_i32 = arith.constant 0 : i32
    %c0_i32_0 = arith.constant 0 : i32
    return %arg0, %c0_i32 : i32, i32
  }
}

</mosaic_0001>

<bundles_post_ra>
// kernel: tpu_custom_call.1
= control target key start
LH: loop header
LB: loop body
LE: loop exit
PB: predicated region body
PF: predicated region fallthrough
CT: control target
= control target key end

     0   :  { %6 = vsyncpa [#allocation3], 0  ;;  %s162_s0 = inlined_call_operand.hbm [shape: f32[8,256], index: 0, kind: input, shape index: {}]   ;;  %s163_s1 = inlined_call_operand.hbm [shape: f32[8,256], index: 1, kind: output, shape index: {}]  }
   0x1   :  { %7 = vsyncpa [#allocation4], 0  ;;  %s126_s6 = smov [#allocation2]   ;;  %s78_s10 = scalar_lea.hbm %s162_s0, 256 }
   0x2   :  { %s14_s7 = sshll.u32 %s126_s6, 4  ;;  %p79_p0 = scmp.ne.s32.totalorder %s162_s0, %s78_s10  ;;  %s15_s7 = int_to_ptr.vmem [resolvable:$true] %s14_s7 }
   0x3   :  { %p82_p1 = scmp.lt.u32.totalorder %s78_s10, %s162_s0 }
   0x5   :  { %p84_p2 = pnand %p82_p1, %p79_p0 }
   0x7   :  { %87 = shalt.err (!%p84_p2)
}
   0x8   :  { %s88_s15 = scalar_lea.vmem %s15_s7, 256  ;;  %p93_p4 = scmp.lt.s32.totalorder %s15_s7, %s15_s7 }
   0x9   :  { %p89_p3 = scmp.ne.s32.totalorder %s15_s7, %s88_s15  ;;  %p94_p5 = scmp.lt.s32.totalorder %s88_s15, %s88_s15 }
   0xb   :  { %p95_p6 = por %p94_p5, %p93_p4 }
   0xd   :  { %p96_p7 = pnand %p95_p6, %p89_p3 }
   0xf   :  { %99 = shalt.err (!%p96_p7)
}
  0x10   :  { %17 = dma.hbm_to_vmem [thread:$0]  %s162_s0, 256, %s15_s7, [#allocation3]  }
  0x11   :  { %122 = dma.done.wait [#allocation3], 256  }
  0x12   :  { %123 = vsyncadd [#allocation3], 4294967040  ;;  %v21_v0 = vld [vmem:[#allocation2] sm:$0xff]  ;;  %v22_v1 = vld [vmem:[#allocation2 + $0x8] sm:$0xff]  ;;  %s127_s0 = smov [#allocation5]  }
  0x13   :  { %v23_v2 = vadd.f32 %v22_v1, %v21_v0  ;;  %s61_s18 = sshll.u32 %s127_s0, 4  ;;  %s62_s18 = int_to_ptr.vmem [resolvable:$true] %s61_s18 }
  0x14   :  { %s100_s19 = scalar_lea.vmem %s62_s18, 256  ;;  %p105_p9 = scmp.lt.s32.totalorder %s62_s18, %s62_s18 }
  0x15   :  { %24 = vadd.xlane.f32.xlu0 %v23_v2  ;;  %p101_p8 = scmp.ne.s32.totalorder %s62_s18, %s100_s19  ;;  %p106_p10 = scmp.lt.s32.totalorder %s100_s19, %s100_s19 }
  0x17   :  { %p107_p11 = por %p106_p10, %p105_p9 }
  0x19   :  { %p108_p12 = pnand %p107_p11, %p101_p8 }
  0xa2   :  { %v25_v3 = vpop.xlane.xlu0 %24 }
  0xa3   :  { %v27_v4 = vmul.f32 0.00390625, %v25_v3 }
  0xa5   :  { %v28_v5 = vsub.f32 %v21_v0, %v27_v4  ;;  %v29_v6 = vsub.f32 %v22_v1, %v27_v4 }
  0xa7   :  { %v30_v7 = vmul.f32 %v28_v5, %v28_v5  ;;  %v31_v8 = vmul.f32 %v29_v6, %v29_v6 }
  0xa9   :  { %v32_v9 = vadd.f32 %v31_v8, %v30_v7 }
  0xab   :  { %33 = vadd.xlane.f32.xlu0 %v32_v9 }
 0x138   :  { %v34_v10 = vpop.xlane.xlu0 %33 }
 0x139   :  { %v35_v11 = vmul.f32 0.003921569, %v34_v10 }
 0x13b   :  { %v36_v12 = vadd.f32 0.0001, %v35_v11 }
 0x13d   :  { %v37_v13 = vmul.f32 4.0, %v36_v12 }
 0x13f   :  { %72 = vrcp.f32 %v37_v13 }
 0x149   :  { %v73_v14 = vpop.eup %72 }
 0x14a   :  { %v39_v15 = vmul.f32 %v73_v14, %v30_v7  ;;  %v40_v16 = vmul.f32 %v73_v14, %v31_v8 }
 0x14c   :  { %v41_v17 = vadd.f32 0.5, %v39_v15  ;;  %v42_v18 = vadd.f32 0.5, %v40_v16 }
 0x14e   :  { %v43_v19 = vmul.f32 0.5, %v41_v17  ;;  %v44_v20 = vmul.f32 0.5, %v42_v18 }
 0x150   :  { %74 = vtanh.f32 %v43_v19 }
 0x151   :  { %76 = vtanh.f32 %v44_v20 }
 0x15a   :  { %v75_v21 = vpop.eup %74 }
 0x15b   :  { %v77_v22 = vpop.eup %76  ;;  %v47_v23 = vmul.f32 0.5, %v75_v21 }
 0x15c   :  { %v48_v24 = vmul.f32 0.5, %v77_v22 }
 0x15d   :  { %v49_v25 = vadd.f32 0.5, %v47_v23 }
 0x15e   :  { %v50_v26 = vadd.f32 0.5, %v48_v24 }
 0x15f   :  { %v51_v27 = vmul.f32 %v49_v25, %v21_v0 }
 0x160   :  { %v52_v28 = vmul.f32 %v50_v26, %v22_v1 }
 0x161   :  { %53 = vst [vmem:[#allocation5] sm:$0xff] %v51_v27 }
 0x162   :  { %54 = vst [vmem:[#allocation5 + $0x8] sm:$0xff] %v52_v28 }
 0x163   :  { %111 = shalt.err (!%p108_p12)
}
 0x164   :  { %s112_s22 = scalar_lea.hbm %s163_s1, 256 }
 0x165   :  { %p113_p13 = scmp.ne.s32.totalorder %s163_s1, %s112_s22  ;;  %p116_p0 = scmp.lt.u32.totalorder %s112_s22, %s163_s1 }
 0x167   :  { %p118_p1 = pnand %p116_p0, %p113_p13 }
 0x169   :  { %121 = shalt.err (!%p118_p1)
}
 0x16a   :  { %64 = dma.vmem_to_hbm [thread:$0]  %s62_s18, 256, %s163_s1, [#allocation4]  }
 0x16b   :  { %124 = dma.done.wait [#allocation4], 256  }
 0x16c   :  { %125 = vsyncadd [#allocation4], 4294967040 }
 0x16d   :  { %68 = vsyncpa [#allocation3], 1 }
 0x16e   :  { %69 = vsyncpa [#allocation4], 1 }

</bundles_post_ra>
